<compile_context>
chip_gen: v7x
topology: tpu7x:2x2x1
jax: 0.10.0
libtpu: 0.0.40
codegen_flags: <defaults>
</compile_context>

<pallas_src>
import functools

import jax
import jax.numpy as jnp
from jax.experimental import pallas as pl
from jax.experimental.pallas import tpu as pltpu


def _sab_kernel(x_ref, a_ref, bf_ref, cf_ref, ba_ref, cb_ref, bo_ref, co_ref,
                out_ref, *, H, W, cin, ca, cout):
    """One block of nb images (stacked along sublanes); everything 2-D."""
    M = out_ref.shape[0]          # nb * H rows
    WCo = W * cout

    # Per-image top/bottom row masks (image boundaries lie along sublanes).
    row = jax.lax.broadcasted_iota(jnp.int32, (M, 1), 0)
    not_top = (row % H) != 0
    not_bot = (row % H) != (H - 1)

    def dy_slabs(t2, c):
        """t2: (M, W*c) lane-dense -> three (M, (W+2)*c) banded-matmul LHS
        slabs for kernel rows dy = 0/1/2; halo rows/cols are zeros."""
        pc = (W + 2) * c
        zc = jnp.zeros((M, c), t2.dtype)
        tw = jnp.concatenate([zc, t2, zc], axis=1)            # width halo
        zr = jnp.zeros((1, pc), t2.dtype)
        up = jnp.concatenate([zr, tw[:M - 1]], axis=0)        # input row h-1
        dn = jnp.concatenate([tw[1:], zr], axis=0)            # input row h+1
        up = jnp.where(not_top, up, jnp.zeros_like(up))       # mask rows that
        dn = jnp.where(not_bot, dn, jnp.zeros_like(dn))       # cross images
        return up, tw, dn

    def band_conv(t2, c, b_ref, bias_ref):
        """3x3 'same' conv as three accumulating banded MXU matmuls."""
        s0, s1, s2 = dy_slabs(t2, c)
        r = jnp.dot(s0, b_ref[0], preferred_element_type=jnp.float32)
        r = r + jnp.dot(s1, b_ref[1], preferred_element_type=jnp.float32)
        r = r + jnp.dot(s2, b_ref[2], preferred_element_type=jnp.float32)
        return r + bias_ref[...]                               # (M, WCo) f32

    feat = band_conv(x_ref[...], cin, bf_ref, cf_ref)
    # Attention conv output is replicated over the Cout lanes (weights packed
    # that way), so the gate is a plain element-wise multiply.  The sigmoid is
    # Cout-x redundant EUP work but EUP has slack here.
    att = jax.nn.sigmoid(band_conv(a_ref[...], ca, ba_ref, cb_ref))
    gated = (feat * att).astype(jnp.bfloat16)
    out = band_conv(gated, cout, bo_ref, co_ref)
    # TODO(synk): emit bf16 at the store (keep f32 accumulation/ReLU) if the
    # consumer accepts it, to halve output HBM writeback.
    out_ref[...] = jnp.maximum(out, 0.0)


def pack_params(params, W):
    """One-time packing of folded-BN conv params into banded matmul weights.

    Returns a tuple of device arrays.  Call once per parameter set, NOT per
    forward pass (the O(W^2) einsum intermediates only get built here).
    """
    wf, bf, wa, ba, wo, bo = params          # HWIO weights, folded-BN biases
    cin, cout = wf.shape[2], wf.shape[3]
    ca = wa.shape[2]
    assert wa.shape[3] == 1, "attention conv must have exactly 1 output channel"
    WCo = W * cout

    # ind[dx, p, w] = 1 iff padded input column p == output column w + dx.
    ind = (jnp.arange(W + 2)[None, :, None] ==
           (jnp.arange(W)[None, None, :] + jnp.arange(3)[:, None, None])
           ).astype(jnp.float32)                               # (3, W+2, W)

    def band(w_hwio):                        # (3,3,ci,co) -> (3, (W+2)*ci, W*co)
        ci, co = w_hwio.shape[2], w_hwio.shape[3]
        b = jnp.einsum('xpw,yxio->ypiwo', ind, w_hwio, precision='highest')
        return b.reshape(3, (W + 2) * ci, W * co).astype(jnp.bfloat16)

    bf_band = band(wf)                                        # feature conv
    bo_band = band(wo)                                        # output conv
    # Attention conv: single output channel replicated over the Cout lanes.
    ba_band = jnp.broadcast_to(
        jnp.einsum('xpw,yxi->ypiw', ind, wa[..., 0],
                   precision='highest')[..., None],
        (3, W + 2, ca, W, cout)).reshape(3, (W + 2) * ca, WCo).astype(jnp.bfloat16)

    cf_row = jnp.tile(bf, W).reshape(1, WCo).astype(jnp.float32)
    co_row = jnp.tile(bo, W).reshape(1, WCo).astype(jnp.float32)
    cb_row = jnp.full((1, WCo), ba[0], jnp.float32)
    return bf_band, cf_row, ba_band, cb_row, bo_band, co_row


@jax.jit
def squeeze_attention_block(x_nchw, a_nchw, packed):
    """NCHW in / NCHW out.  `packed` = pack_params(params, W), precomputed."""
    bf_b, cf_b, ba_b, cb_b, bo_b, co_b = packed
    N, Cin, H, W = x_nchw.shape
    Ca = a_nchw.shape[1]
    WCo = cf_b.shape[1]
    Cout = WCo // W

    # Lane-dense activations (channel minor), x and a kept as separate inputs
    # (no channel-concat HBM pass).
    # TODO(synk): accept NHWC inputs upstream to drop these two transposes
    # (each is a full extra HBM read+write of the activations).
    x2 = jnp.transpose(x_nchw, (0, 2, 3, 1)).reshape(N * H, W * Cin)
    a2 = jnp.transpose(a_nchw, (0, 2, 3, 1)).reshape(N * H, W * Ca)
    x2 = x2.astype(jnp.bfloat16)
    a2 = a2.astype(jnp.bfloat16)

    # Batch several images per grid step so the matmul M dim (= nb*H) fills
    # the MXU (128-deep on v5e, 256 on v6e/v7x).
    nb = min(N, max(1, 256 // H))
    pad = (-N) % nb
    if pad:
        x2 = jnp.concatenate([x2, jnp.zeros((pad * H, x2.shape[1]), x2.dtype)], 0)
        a2 = jnp.concatenate([a2, jnp.zeros((pad * H, a2.shape[1]), a2.dtype)], 0)
    Np = N + pad
    Mb = nb * H
    grid = (Np // nb,)

    # Explicit scoped-VMEM budget: double-buffered blocks + compute headroom.
    blk_bytes = (Mb * (W * Cin * 2 + W * Ca * 2 + WCo * 4)
                 + sum(b.size * b.dtype.itemsize
                       for b in (bf_b, cf_b, ba_b, cb_b, bo_b, co_b)))
    vmem_limit = int(min(max(3 * blk_bytes + (4 << 20), 16 << 20), 100 << 20))

    kernel = functools.partial(_sab_kernel, H=H, W=W,
                               cin=Cin, ca=Ca, cout=Cout)

    # TODO(synk): for large W add a width-tile grid axis (W_tile*Cout = 128 /
    # 256) so the O(W^2) banded weights stay small; for large H (or N==1 on
    # v7x) add a halo'd H-row-tile "parallel" axis so both v7x TensorCores get
    # work; single-buffer the grid-constant weight operands (pl.Buffered(1))
    # once they dominate VMEM.
    out2 = pl.pallas_call(
        kernel,
        out_shape=jax.ShapeDtypeStruct((Np * H, WCo), jnp.float32),
        grid_spec=pltpu.PrefetchScalarGridSpec(
            num_scalar_prefetch=0,
            grid=grid,
            in_specs=[
                pl.BlockSpec((Mb, W * Cin), lambda g: (g, 0)),
                pl.BlockSpec((Mb, W * Ca), lambda g: (g, 0)),
                pl.BlockSpec(bf_b.shape, lambda g: (0, 0, 0)),
                pl.BlockSpec(cf_b.shape, lambda g: (0, 0)),
                pl.BlockSpec(ba_b.shape, lambda g: (0, 0, 0)),
                pl.BlockSpec(cb_b.shape, lambda g: (0, 0)),
                pl.BlockSpec(bo_b.shape, lambda g: (0, 0, 0)),
                pl.BlockSpec(co_b.shape, lambda g: (0, 0)),
            ],
            out_specs=pl.BlockSpec((Mb, WCo), lambda g: (g, 0)),
        ),
        compiler_params=pltpu.CompilerParams(
            dimension_semantics=("parallel",),
            vmem_limit_bytes=vmem_limit),
    )(x2, a2, bf_b, cf_b, ba_b, cb_b, bo_b, co_b)

    out = out2[:N * H].reshape(N, H, W, Cout)
    return jnp.transpose(out, (0, 3, 1, 2))


def _make_conv_bn(key, cin, cout, eps=1e-5):
    """Deterministic Conv2d(3x3) + BatchNorm2d params, BN folded into conv.

    Returns (w_hwio, bias) with BN (inference mode) already folded in.
    """
    kw, kb, kg, kbe, km, kv = jax.random.split(key, 6)
    w = 0.1 * jax.random.normal(kw, (cout, cin, 3, 3), jnp.float32)   # OIHW
    b = 0.1 * jax.random.normal(kb, (cout,), jnp.float32)
    gamma = 1.0 + 0.1 * jax.random.normal(kg, (cout,), jnp.float32)
    beta = 0.05 * jax.random.normal(kbe, (cout,), jnp.float32)
    mean = 0.1 * jax.random.normal(km, (cout,), jnp.float32)
    var = 0.5 + 0.5 * jax.nn.sigmoid(jax.random.normal(kv, (cout,), jnp.float32))
    scale = gamma / jnp.sqrt(var + eps)
    w_folded = jnp.transpose(w * scale[:, None, None, None], (2, 3, 1, 0))  # HWIO
    b_folded = (b - mean) * scale + beta
    return w_folded, b_folded


def _ref_forward(x_nchw, a_nchw, params):
    """Pure-JAX f32 reference (same folded-BN math) for verification."""
    wf, bf, wa, ba, wo_w, bo = params

    def conv(x, w, b):
        y = jax.lax.conv_general_dilated(
            x, w, window_strides=(1, 1), padding="SAME",
            dimension_numbers=("NHWC", "HWIO", "NHWC"))
        return y + b.reshape(1, 1, 1, -1)

    x = jnp.transpose(x_nchw, (0, 2, 3, 1))
    a = jnp.transpose(a_nchw, (0, 2, 3, 1))
    feat = conv(x, wf, bf)
    att = jax.nn.sigmoid(conv(a, wa, ba))
    out = jnp.maximum(conv(feat * att, wo_w, bo), 0.0)
    return jnp.transpose(out, (0, 3, 1, 2))


if __name__ == "__main__":
    key = jax.random.PRNGKey(0)
    k_x, k_a, k_f, k_att, k_o = jax.random.split(key, 5)

    N, in_ch, a_ch, out_ch, H, W = 2, 4, 4, 8, 16, 16
    x = jax.random.normal(k_x, (N, in_ch, H, W), jnp.float32)   # NCHW
    a = jax.random.normal(k_a, (N, a_ch, H, W), jnp.float32)    # NCHW

    wf, bf = _make_conv_bn(k_f, in_ch, out_ch)     # feature conv + BN (folded)
    wa, ba = _make_conv_bn(k_att, a_ch, 1)         # attention conv + BN (folded)
    wo_w, bo = _make_conv_bn(k_o, out_ch, out_ch)  # output conv + BN (folded)
    params = (wf, bf, wa, ba, wo_w, bo)

    packed = pack_params(params, W)                # one-time weight packing

    out = squeeze_attention_block(x, a, packed)
    out = jax.block_until_ready(out)

    ref = _ref_forward(x, a, params)
    assert out.shape == (N, out_ch, H, W)
    max_err = float(jnp.max(jnp.abs(out - ref)))
    # bf16 matmul operands (and a bf16 cast of the gated activation) inside
    # the kernel -> loosened tolerance vs the f32 reference.
    if not max_err < 5e-2:
        raise AssertionError(f"kernel/reference mismatch: max abs err = {max_err}")

    print("KERNEL_OK")
</pallas_src>

<mosaic_0001>
module attributes {stable_mosaic.version = 11 : i64} {
  func.func @_sab_kernel(%arg0: i32, %arg1: memref<32x64xbf16, #tpu.memory_space<vmem>>, %arg2: memref<32x64xbf16, #tpu.memory_space<vmem>>, %arg3: memref<3x72x128xbf16, #tpu.memory_space<vmem>>, %arg4: memref<1x128xf32, #tpu.memory_space<vmem>>, %arg5: memref<3x72x128xbf16, #tpu.memory_space<vmem>>, %arg6: memref<1x128xf32, #tpu.memory_space<vmem>>, %arg7: memref<3x144x128xbf16, #tpu.memory_space<vmem>>, %arg8: memref<1x128xf32, #tpu.memory_space<vmem>>, %arg9: memref<32x128xf32, #tpu.memory_space<vmem>>) attributes {dimension_semantics = [#tpu.dimension_semantics<parallel>], iteration_bounds = array<i64: 1>, scalar_prefetch = 0 : i64, scratch_operands = 0 : i64, tpu.core_type = #tpu.core_type<tc>, window_params = [{transform_indices = @transform_0, window_bounds = array<i64: 32, 64>}, {transform_indices = @transform_1, window_bounds = array<i64: 32, 64>}, {pipeline_mode = #tpu.pipeline_mode<synchronous>, transform_indices = @transform_2, window_bounds = array<i64: 3, 72, 128>}, {pipeline_mode = #tpu.pipeline_mode<synchronous>, transform_indices = @transform_3, window_bounds = array<i64: 1, 128>}, {pipeline_mode = #tpu.pipeline_mode<synchronous>, transform_indices = @transform_4, window_bounds = array<i64: 3, 72, 128>}, {pipeline_mode = #tpu.pipeline_mode<synchronous>, transform_indices = @transform_5, window_bounds = array<i64: 1, 128>}, {pipeline_mode = #tpu.pipeline_mode<synchronous>, transform_indices = @transform_6, window_bounds = array<i64: 3, 144, 128>}, {pipeline_mode = #tpu.pipeline_mode<synchronous>, transform_indices = @transform_7, window_bounds = array<i64: 1, 128>}, {transform_indices = @transform_8, window_bounds = array<i64: 32, 128>}]} {
    %0 = tpu.iota {dimensions = array<i32: 0>} : vector<32x1xi32>
    %c16_i32 = arith.constant 16 : i32
    %c0_i32 = arith.constant 0 : i32
    %1 = arith.cmpi eq, %c16_i32, %c0_i32 : i32
    %c1_i32 = arith.constant 1 : i32
    %2 = arith.select %1, %c1_i32, %c16_i32 : i32
    %3 = vector.broadcast %2 : i32 to vector<32x1xi32>
    %4 = arith.remsi %0, %3 : vector<32x1xi32>
    %c0_i32_0 = arith.constant 0 : i32
    %5 = vector.broadcast %c0_i32_0 : i32 to vector<32x1xi32>
    %6 = arith.cmpi ne, %4, %5 : vector<32x1xi32>
    %c0_i32_1 = arith.constant 0 : i32
    %7 = vector.broadcast %c0_i32_1 : i32 to vector<32x1xi32>
    %8 = arith.cmpi slt, %4, %7 : vector<32x1xi32>
    %c0_i32_2 = arith.constant 0 : i32
    %9 = arith.cmpi slt, %2, %c0_i32_2 : i32
    %10 = vector.broadcast %9 : i1 to vector<32x1xi1>
    %11 = vector.broadcast %10 : vector<32x1xi1> to vector<32x1xi1>
    %12 = arith.xori %8, %11 : vector<32x1xi1>
    %13 = arith.andi %12, %6 : vector<32x1xi1>
    %14 = vector.broadcast %2 : i32 to vector<32x1xi32>
    %15 = arith.addi %4, %14 : vector<32x1xi32>
    %16 = arith.select %13, %15, %4 : vector<32x1xi1>, vector<32x1xi32>
    %c0_i32_3 = arith.constant 0 : i32
    %17 = vector.broadcast %c0_i32_3 : i32 to vector<32x1xi32>
    %18 = arith.cmpi ne, %16, %17 : vector<32x1xi32>
    %c16_i32_4 = arith.constant 16 : i32
    %c0_i32_5 = arith.constant 0 : i32
    %19 = arith.cmpi eq, %c16_i32_4, %c0_i32_5 : i32
    %c1_i32_6 = arith.constant 1 : i32
    %20 = arith.select %19, %c1_i32_6, %c16_i32_4 : i32
    %21 = vector.broadcast %20 : i32 to vector<32x1xi32>
    %22 = arith.remsi %0, %21 : vector<32x1xi32>
    %c0_i32_7 = arith.constant 0 : i32
    %23 = vector.broadcast %c0_i32_7 : i32 to vector<32x1xi32>
    %24 = arith.cmpi ne, %22, %23 : vector<32x1xi32>
    %c0_i32_8 = arith.constant 0 : i32
    %25 = vector.broadcast %c0_i32_8 : i32 to vector<32x1xi32>
    %26 = arith.cmpi slt, %22, %25 : vector<32x1xi32>
    %c0_i32_9 = arith.constant 0 : i32
    %27 = arith.cmpi slt, %20, %c0_i32_9 : i32
    %28 = vector.broadcast %27 : i1 to vector<32x1xi1>
    %29 = vector.broadcast %28 : vector<32x1xi1> to vector<32x1xi1>
    %30 = arith.xori %26, %29 : vector<32x1xi1>
    %31 = arith.andi %30, %24 : vector<32x1xi1>
    %32 = vector.broadcast %20 : i32 to vector<32x1xi32>
    %33 = arith.addi %22, %32 : vector<32x1xi32>
    %34 = arith.select %31, %33, %22 : vector<32x1xi1>, vector<32x1xi32>
    %c15_i32 = arith.constant 15 : i32
    %35 = vector.broadcast %c15_i32 : i32 to vector<32x1xi32>
    %36 = arith.cmpi ne, %34, %35 : vector<32x1xi32>
    %c0 = arith.constant 0 : index
    %c0_10 = arith.constant 0 : index
    %37 = vector.load %arg1[%c0, %c0_10] : memref<32x64xbf16, #tpu.memory_space<vmem>>, vector<32x64xbf16>
    %cst = arith.constant 0.000000e+00 : bf16
    %38 = vector.broadcast %cst : bf16 to vector<32x4xbf16>
    %39 = tpu.concatenate %38, %37, %38 in 1 : vector<32x4xbf16>, vector<32x64xbf16>, vector<32x4xbf16> -> vector<32x72xbf16>
    %cst_11 = arith.constant 0.000000e+00 : bf16
    %40 = vector.broadcast %cst_11 : bf16 to vector<1x72xbf16>
    %41 = vector.extract_strided_slice %39 {offsets = [0, 0], sizes = [31, 72], strides = [1, 1]} : vector<32x72xbf16> to vector<31x72xbf16>
    %42 = tpu.concatenate %40, %41 in 0 : vector<1x72xbf16>, vector<31x72xbf16> -> vector<32x72xbf16>
    %43 = vector.extract_strided_slice %39 {offsets = [1, 0], sizes = [31, 72], strides = [1, 1]} : vector<32x72xbf16> to vector<31x72xbf16>
    %44 = tpu.concatenate %43, %40 in 0 : vector<31x72xbf16>, vector<1x72xbf16> -> vector<32x72xbf16>
    %cst_12 = arith.constant 0.000000e+00 : bf16
    %45 = vector.broadcast %cst_12 : bf16 to vector<32x72xbf16>
    %46 = vector.shape_cast %18 : vector<32x1xi1> to vector<32x1xi1>
    %47 = vector.broadcast %46 : vector<32x1xi1> to vector<32x72xi1>
    %48 = arith.select %47, %42, %45 : vector<32x72xi1>, vector<32x72xbf16>
    %cst_13 = arith.constant 0.000000e+00 : bf16
    %49 = vector.broadcast %cst_13 : bf16 to vector<32x72xbf16>
    %50 = vector.shape_cast %36 : vector<32x1xi1> to vector<32x1xi1>
    %51 = vector.broadcast %50 : vector<32x1xi1> to vector<32x72xi1>
    %52 = arith.select %51, %44, %49 : vector<32x72xi1>, vector<32x72xbf16>
    %c0_14 = arith.constant 0 : index
    %c0_15 = arith.constant 0 : index
    %c0_16 = arith.constant 0 : index
    %53 = vector.load %arg3[%c0_14, %c0_15, %c0_16] : memref<3x72x128xbf16, #tpu.memory_space<vmem>>, vector<1x72x128xbf16>
    %54 = vector.shape_cast %53 : vector<1x72x128xbf16> to vector<72x128xbf16>
    %cst_17 = arith.constant dense<0.000000e+00> : vector<32x128xf32>
    %55 = tpu.matmul %48, %54, %cst_17 {dimension_numbers = #tpu.dot_dimension_numbers<[1], [0], [0], [1], [0, 0, 1, 1], [], []>} : vector<32x72xbf16>, vector<72x128xbf16>, vector<32x128xf32> -> vector<32x128xf32>
    %c1 = arith.constant 1 : index
    %c0_18 = arith.constant 0 : index
    %c0_19 = arith.constant 0 : index
    %56 = vector.load %arg3[%c1, %c0_18, %c0_19] : memref<3x72x128xbf16, #tpu.memory_space<vmem>>, vector<1x72x128xbf16>
    %57 = vector.shape_cast %56 : vector<1x72x128xbf16> to vector<72x128xbf16>
    %cst_20 = arith.constant dense<0.000000e+00> : vector<32x128xf32>
    %58 = tpu.matmul %39, %57, %cst_20 {dimension_numbers = #tpu.dot_dimension_numbers<[1], [0], [0], [1], [0, 0, 1, 1], [], []>} : vector<32x72xbf16>, vector<72x128xbf16>, vector<32x128xf32> -> vector<32x128xf32>
    %59 = arith.addf %55, %58 : vector<32x128xf32>
    %c2 = arith.constant 2 : index
    %c0_21 = arith.constant 0 : index
    %c0_22 = arith.constant 0 : index
    %60 = vector.load %arg3[%c2, %c0_21, %c0_22] : memref<3x72x128xbf16, #tpu.memory_space<vmem>>, vector<1x72x128xbf16>
    %61 = vector.shape_cast %60 : vector<1x72x128xbf16> to vector<72x128xbf16>
    %cst_23 = arith.constant dense<0.000000e+00> : vector<32x128xf32>
    %62 = tpu.matmul %52, %61, %cst_23 {dimension_numbers = #tpu.dot_dimension_numbers<[1], [0], [0], [1], [0, 0, 1, 1], [], []>} : vector<32x72xbf16>, vector<72x128xbf16>, vector<32x128xf32> -> vector<32x128xf32>
    %63 = arith.addf %59, %62 : vector<32x128xf32>
    %c0_24 = arith.constant 0 : index
    %c0_25 = arith.constant 0 : index
    %64 = vector.load %arg4[%c0_24, %c0_25] : memref<1x128xf32, #tpu.memory_space<vmem>>, vector<1x128xf32>
    %65 = vector.broadcast %64 : vector<1x128xf32> to vector<32x128xf32>
    %66 = arith.addf %63, %65 : vector<32x128xf32>
    %c0_26 = arith.constant 0 : index
    %c0_27 = arith.constant 0 : index
    %67 = vector.load %arg2[%c0_26, %c0_27] : memref<32x64xbf16, #tpu.memory_space<vmem>>, vector<32x64xbf16>
    %cst_28 = arith.constant 0.000000e+00 : bf16
    %68 = vector.broadcast %cst_28 : bf16 to vector<32x4xbf16>
    %69 = tpu.concatenate %68, %67, %68 in 1 : vector<32x4xbf16>, vector<32x64xbf16>, vector<32x4xbf16> -> vector<32x72xbf16>
    %cst_29 = arith.constant 0.000000e+00 : bf16
    %70 = vector.broadcast %cst_29 : bf16 to vector<1x72xbf16>
    %71 = vector.extract_strided_slice %69 {offsets = [0, 0], sizes = [31, 72], strides = [1, 1]} : vector<32x72xbf16> to vector<31x72xbf16>
    %72 = tpu.concatenate %70, %71 in 0 : vector<1x72xbf16>, vector<31x72xbf16> -> vector<32x72xbf16>
    %73 = vector.extract_strided_slice %69 {offsets = [1, 0], sizes = [31, 72], strides = [1, 1]} : vector<32x72xbf16> to vector<31x72xbf16>
    %74 = tpu.concatenate %73, %70 in 0 : vector<31x72xbf16>, vector<1x72xbf16> -> vector<32x72xbf16>
    %cst_30 = arith.constant 0.000000e+00 : bf16
    %75 = vector.broadcast %cst_30 : bf16 to vector<32x72xbf16>
    %76 = vector.shape_cast %18 : vector<32x1xi1> to vector<32x1xi1>
    %77 = vector.broadcast %76 : vector<32x1xi1> to vector<32x72xi1>
    %78 = arith.select %77, %72, %75 : vector<32x72xi1>, vector<32x72xbf16>
    %cst_31 = arith.constant 0.000000e+00 : bf16
    %79 = vector.broadcast %cst_31 : bf16 to vector<32x72xbf16>
    %80 = vector.shape_cast %36 : vector<32x1xi1> to vector<32x1xi1>
    %81 = vector.broadcast %80 : vector<32x1xi1> to vector<32x72xi1>
    %82 = arith.select %81, %74, %79 : vector<32x72xi1>, vector<32x72xbf16>
    %c0_32 = arith.constant 0 : index
    %c0_33 = arith.constant 0 : index
    %c0_34 = arith.constant 0 : index
    %83 = vector.load %arg5[%c0_32, %c0_33, %c0_34] : memref<3x72x128xbf16, #tpu.memory_space<vmem>>, vector<1x72x128xbf16>
    %84 = vector.shape_cast %83 : vector<1x72x128xbf16> to vector<72x128xbf16>
    %cst_35 = arith.constant dense<0.000000e+00> : vector<32x128xf32>
    %85 = tpu.matmul %78, %84, %cst_35 {dimension_numbers = #tpu.dot_dimension_numbers<[1], [0], [0], [1], [0, 0, 1, 1], [], []>} : vector<32x72xbf16>, vector<72x128xbf16>, vector<32x128xf32> -> vector<32x128xf32>
    %c1_36 = arith.constant 1 : index
    %c0_37 = arith.constant 0 : index
    %c0_38 = arith.constant 0 : index
    %86 = vector.load %arg5[%c1_36, %c0_37, %c0_38] : memref<3x72x128xbf16, #tpu.memory_space<vmem>>, vector<1x72x128xbf16>
    %87 = vector.shape_cast %86 : vector<1x72x128xbf16> to vector<72x128xbf16>
    %cst_39 = arith.constant dense<0.000000e+00> : vector<32x128xf32>
    %88 = tpu.matmul %69, %87, %cst_39 {dimension_numbers = #tpu.dot_dimension_numbers<[1], [0], [0], [1], [0, 0, 1, 1], [], []>} : vector<32x72xbf16>, vector<72x128xbf16>, vector<32x128xf32> -> vector<32x128xf32>
    %89 = arith.addf %85, %88 : vector<32x128xf32>
    %c2_40 = arith.constant 2 : index
    %c0_41 = arith.constant 0 : index
    %c0_42 = arith.constant 0 : index
    %90 = vector.load %arg5[%c2_40, %c0_41, %c0_42] : memref<3x72x128xbf16, #tpu.memory_space<vmem>>, vector<1x72x128xbf16>
    %91 = vector.shape_cast %90 : vector<1x72x128xbf16> to vector<72x128xbf16>
    %cst_43 = arith.constant dense<0.000000e+00> : vector<32x128xf32>
    %92 = tpu.matmul %82, %91, %cst_43 {dimension_numbers = #tpu.dot_dimension_numbers<[1], [0], [0], [1], [0, 0, 1, 1], [], []>} : vector<32x72xbf16>, vector<72x128xbf16>, vector<32x128xf32> -> vector<32x128xf32>
    %93 = arith.addf %89, %92 : vector<32x128xf32>
    %c0_44 = arith.constant 0 : index
    %c0_45 = arith.constant 0 : index
    %94 = vector.load %arg6[%c0_44, %c0_45] : memref<1x128xf32, #tpu.memory_space<vmem>>, vector<1x128xf32>
    %95 = vector.broadcast %94 : vector<1x128xf32> to vector<32x128xf32>
    %96 = arith.addf %93, %95 : vector<32x128xf32>
    %97 = arith.negf %96 : vector<32x128xf32>
    %98 = math.exp %97 : vector<32x128xf32>
    %cst_46 = arith.constant 1.000000e+00 : f32
    %99 = vector.broadcast %cst_46 : f32 to vector<32x128xf32>
    %100 = arith.addf %99, %98 : vector<32x128xf32>
    %101 = arith.divf %99, %100 : vector<32x128xf32>
    %102 = arith.mulf %66, %101 : vector<32x128xf32>
    %103 = arith.truncf %102 : vector<32x128xf32> to vector<32x128xbf16>
    %cst_47 = arith.constant 0.000000e+00 : bf16
    %104 = vector.broadcast %cst_47 : bf16 to vector<32x8xbf16>
    %105 = tpu.concatenate %104, %103, %104 in 1 : vector<32x8xbf16>, vector<32x128xbf16>, vector<32x8xbf16> -> vector<32x144xbf16>
    %cst_48 = arith.constant 0.000000e+00 : bf16
    %106 = vector.broadcast %cst_48 : bf16 to vector<1x144xbf16>
    %107 = vector.extract_strided_slice %105 {offsets = [0, 0], sizes = [31, 144], strides = [1, 1]} : vector<32x144xbf16> to vector<31x144xbf16>
    %108 = tpu.concatenate %106, %107 in 0 : vector<1x144xbf16>, vector<31x144xbf16> -> vector<32x144xbf16>
    %109 = vector.extract_strided_slice %105 {offsets = [1, 0], sizes = [31, 144], strides = [1, 1]} : vector<32x144xbf16> to vector<31x144xbf16>
    %110 = tpu.concatenate %109, %106 in 0 : vector<31x144xbf16>, vector<1x144xbf16> -> vector<32x144xbf16>
    %cst_49 = arith.constant 0.000000e+00 : bf16
    %111 = vector.broadcast %cst_49 : bf16 to vector<32x144xbf16>
    %112 = vector.shape_cast %18 : vector<32x1xi1> to vector<32x1xi1>
    %113 = vector.broadcast %112 : vector<32x1xi1> to vector<32x144xi1>
    %114 = arith.select %113, %108, %111 : vector<32x144xi1>, vector<32x144xbf16>
    %cst_50 = arith.constant 0.000000e+00 : bf16
    %115 = vector.broadcast %cst_50 : bf16 to vector<32x144xbf16>
    %116 = vector.shape_cast %36 : vector<32x1xi1> to vector<32x1xi1>
    %117 = vector.broadcast %116 : vector<32x1xi1> to vector<32x144xi1>
    %118 = arith.select %117, %110, %115 : vector<32x144xi1>, vector<32x144xbf16>
    %c0_51 = arith.constant 0 : index
    %c0_52 = arith.constant 0 : index
    %c0_53 = arith.constant 0 : index
    %119 = vector.load %arg7[%c0_51, %c0_52, %c0_53] : memref<3x144x128xbf16, #tpu.memory_space<vmem>>, vector<1x144x128xbf16>
    %120 = vector.shape_cast %119 : vector<1x144x128xbf16> to vector<144x128xbf16>
    %cst_54 = arith.constant dense<0.000000e+00> : vector<32x128xf32>
    %121 = tpu.matmul %114, %120, %cst_54 {dimension_numbers = #tpu.dot_dimension_numbers<[1], [0], [0], [1], [0, 0, 1, 1], [], []>} : vector<32x144xbf16>, vector<144x128xbf16>, vector<32x128xf32> -> vector<32x128xf32>
    %c1_55 = arith.constant 1 : index
    %c0_56 = arith.constant 0 : index
    %c0_57 = arith.constant 0 : index
    %122 = vector.load %arg7[%c1_55, %c0_56, %c0_57] : memref<3x144x128xbf16, #tpu.memory_space<vmem>>, vector<1x144x128xbf16>
    %123 = vector.shape_cast %122 : vector<1x144x128xbf16> to vector<144x128xbf16>
    %cst_58 = arith.constant dense<0.000000e+00> : vector<32x128xf32>
    %124 = tpu.matmul %105, %123, %cst_58 {dimension_numbers = #tpu.dot_dimension_numbers<[1], [0], [0], [1], [0, 0, 1, 1], [], []>} : vector<32x144xbf16>, vector<144x128xbf16>, vector<32x128xf32> -> vector<32x128xf32>
    %125 = arith.addf %121, %124 : vector<32x128xf32>
    %c2_59 = arith.constant 2 : index
    %c0_60 = arith.constant 0 : index
    %c0_61 = arith.constant 0 : index
    %126 = vector.load %arg7[%c2_59, %c0_60, %c0_61] : memref<3x144x128xbf16, #tpu.memory_space<vmem>>, vector<1x144x128xbf16>
    %127 = vector.shape_cast %126 : vector<1x144x128xbf16> to vector<144x128xbf16>
    %cst_62 = arith.constant dense<0.000000e+00> : vector<32x128xf32>
    %128 = tpu.matmul %118, %127, %cst_62 {dimension_numbers = #tpu.dot_dimension_numbers<[1], [0], [0], [1], [0, 0, 1, 1], [], []>} : vector<32x144xbf16>, vector<144x128xbf16>, vector<32x128xf32> -> vector<32x128xf32>
    %129 = arith.addf %125, %128 : vector<32x128xf32>
    %c0_63 = arith.constant 0 : index
    %c0_64 = arith.constant 0 : index
    %130 = vector.load %arg8[%c0_63, %c0_64] : memref<1x128xf32, #tpu.memory_space<vmem>>, vector<1x128xf32>
    %131 = vector.broadcast %130 : vector<1x128xf32> to vector<32x128xf32>
    %132 = arith.addf %129, %131 : vector<32x128xf32>
    %cst_65 = arith.constant 0.000000e+00 : f32
    %133 = vector.broadcast %cst_65 : f32 to vector<32x128xf32>
    %134 = arith.maximumf %132, %133 : vector<32x128xf32>
    %c0_66 = arith.constant 0 : index
    %c0_67 = arith.constant 0 : index
    %135 = vector.load %arg9[%c0_66, %c0_67] : memref<32x128xf32, #tpu.memory_space<vmem>>, vector<32x128xf32>
    tpu.vector_store %arg9[%c0_66, %c0_67], %134 {strides = array<i32>} : memref<32x128xf32, #tpu.memory_space<vmem>>, vector<32x128xf32>,
    return
  }
  func.func @transform_0(%arg0: i32) -> (i32, i32) {
    %c0_i32 = arith.constant 0 : i32
    %c0_i32_0 = arith.constant 0 : i32
    return %arg0, %c0_i32 : i32, i32
  }
  func.func @transform_1(%arg0: i32) -> (i32, i32) {
    %c0_i32 = arith.constant 0 : i32
    %c0_i32_0 = arith.constant 0 : i32
    return %arg0, %c0_i32 : i32, i32
  }
  func.func @transform_2(%arg0: i32) -> (i32, i32, i32) {
    %c0_i32 = arith.constant 0 : i32
    %c0_i32_0 = arith.constant 0 : i32
    %c0_i32_1 = arith.constant 0 : i32
    %c0_i32_2 = arith.constant 0 : i32
    return %c0_i32, %c0_i32_0, %c0_i32_1 : i32, i32, i32
  }
  func.func @transform_3(%arg0: i32) -> (i32, i32) {
    %c0_i32 = arith.constant 0 : i32
    %c0_i32_0 = arith.constant 0 : i32
    %c0_i32_1 = arith.constant 0 : i32
    return %c0_i32, %c0_i32_0 : i32, i32
  }
  func.func @transform_4(%arg0: i32) -> (i32, i32, i32) {
    %c0_i32 = arith.constant 0 : i32
    %c0_i32_0 = arith.constant 0 : i32
    %c0_i32_1 = arith.constant 0 : i32
    %c0_i32_2 = arith.constant 0 : i32
    return %c0_i32, %c0_i32_0, %c0_i32_1 : i32, i32, i32
  }
  func.func @transform_5(%arg0: i32) -> (i32, i32) {
    %c0_i32 = arith.constant 0 : i32
    %c0_i32_0 = arith.constant 0 : i32
    %c0_i32_1 = arith.constant 0 : i32
    return %c0_i32, %c0_i32_0 : i32, i32
  }
  func.func @transform_6(%arg0: i32) -> (i32, i32, i32) {
    %c0_i32 = arith.constant 0 : i32
    %c0_i32_0 = arith.constant 0 : i32
    %c0_i32_1 = arith.constant 0 : i32
    %c0_i32_2 = arith.constant 0 : i32
    return %c0_i32, %c0_i32_0, %c0_i32_1 : i32, i32, i32
  }
  func.func @transform_7(%arg0: i32) -> (i32, i32) {
    %c0_i32 = arith.constant 0 : i32
    %c0_i32_0 = arith.constant 0 : i32
    %c0_i32_1 = arith.constant 0 : i32
    return %c0_i32, %c0_i32_0 : i32, i32
  }
  func.func @transform_8(%arg0: i32) -> (i32, i32) {
    %c0_i32 = arith.constant 0 : i32
    %c0_i32_0 = arith.constant 0 : i32
    return %arg0, %c0_i32 : i32, i32
  }
}

</mosaic_0001>

<bundles_post_ra>
// kernel: squeeze_attention_block.1
= control target key start
LH: loop header
LB: loop body
LE: loop exit
PB: predicated region body
PF: predicated region fallthrough
CT: control target
= control target key end

     0   :  { %s1759_s9 = smov 4   ;;  %vm253_vm0 = vcmask 1043456   ;;  %v32_v18 = vlaneseq  ;;  %vm1760_vm3 = vmmov 1   ;;  %vm111_vm6 = vcmask 31744   ;;  %s2243_s0 = inlined_call_operand.vmem [shape: bf16[32,64], index: 0, kind: input, shape index: {}]   ;;  %s2244_s1 = inlined_call_operand.vmem [shape: bf16[32,64], index: 1, kind: input, shape index: {}]   ;;  %s2245_s2 = inlined_call_operand.vmem [shape: bf16[3,72,128], index: 2, kind: input, shape index: {}]   ;;  %s2246_s4 = inlined_call_operand.vmem [shape: bf16[3,72,128], index: 4, kind: input, shape index: {}]   ;;  %s2247_s6 = inlined_call_operand.vmem [shape: bf16[3,144,128], index: 6, kind: input, shape index: {}]   ;;  %s2248_s5 = inlined_call_operand.vmem [shape: f32[1,128], index: 5, kind: input, shape index: {}]   ;;  %s2249_s3 = inlined_call_operand.vmem [shape: f32[1,128], index: 3, kind: input, shape index: {}]   ;;  %s2250_s7 = inlined_call_operand.vmem [shape: f32[1,128], index: 7, kind: input, shape index: {}]   ;;  %s2251_s8 = inlined_call_operand.vmem [shape: f32[32,128], index: 8, kind: output, shape index: {}]  }
   0x1   :  { %v1682_v0 = vld [vmem:[%s2243_s0] sm:$0xff]   ;;  %v1683_v1 = vld [vmem:[%s2243_s0 + $0x8] sm:$0xff]   ;;  %v1688_v7 = vld [vmem:[%s2245_s2 + $0x34] sm:$0xff]   ;;  %vm117_vm7 = vcmask 556032   ;;  %v1761_v26 = vmov 0   ;;  %vm248_vm9 = vcmask 588800  }
   0x2   :  { %107 = vrot.lane.b32.xlu0 %v1682_v0, %s1759_s9  ;;  %v1684_v2 = vld [vmem:[%s2244_s1] sm:$0xff]   ;;  %v1685_v3 = vld [vmem:[%s2244_s1 + $0x8] sm:$0xff]   ;;  %v1693_v9 = vld [vmem:[%s2245_s2 + $0x10] sm:$0xff]   ;;  %v33_v19 = vshrl.u32 %v32_v18, 7  ;;  %vm136_vm11 = vcmask 1040384  }
   0x3   :  { %515 = vrot.lane.b32.xlu1 %v1684_v2, %s1759_s9  ;;  %v1686_v4 = vld [vmem:[%s2245_s2 + $0x24] sm:$0xff]   ;;  %v1687_v5 = vld [vmem:[%s2245_s2 + $0x2c] sm:$0xff]   ;;  %v1690_v10 = vld [vmem:[%s2245_s2 + $0x3c] sm:$0xff]   ;;  %vm120_vm12 = vsmask.f32 256 }
   0x4   :  { %1572 = vmatprep.subr.bf16.mxu1 %v1686_v4  ;;  %v1689_v6 = vld [vmem:[%s2245_s2] sm:$0xff]   ;;  %v1691_v8 = vld [vmem:[%s2245_s2 + $0x8] sm:$0xff]   ;;  %v1694_v11 = vld [vmem:[%s2245_s2 + $0x18] sm:$0xff]   ;;  %v41_v20 = vand.u32 15, %v33_v19  ;;  %v35_v21 = vadd.s32 16, %v33_v19  ;;  %v34_v23 = vadd.s32 8, %v33_v19 }
   0x5   :  { %1573 = vmatpush3.bf16.msra.mxu1 %v1686_v4  ;;  %1586 = vmatprep.subr.bf16.mxu0 %v1689_v6  ;;  %v1692_v12 = vld [vmem:[%s2245_s2 + $0x44] ss:$0 sps:$4 sm:$0xff]   ;;  %v1696_v13 = vld [vmem:[%s2245_s2 + $0x20] ss:$0 sps:$4 sm:$0xff]   ;;  %v1860_v17 = vld [vmem:[%s2245_s2 + $0x48] sm:$0xff]   ;;  %v36_v59 = vadd.s32 24, %v33_v19 }
   0x6   :  { %109 = vrot.lane.b32.xlu0 %v1683_v1, %s1759_s9  ;;  %1574 = vmatprep.subr.bf16.mxu1 %v1687_v5  ;;  %v255_v14 = vsel %vm253_vm0, %v1692_v12, 0  ;;  %v1695_v15 = vld [vmem:[%s2246_s4 + $0x24] sm:$0xff]   ;;  %v340_v16 = vsel %vm253_vm0, %v1696_v13, 0  ;;  %vm85_vm1 = vcmp.ne.s32.totalorder %v41_v20, 0  ;;  %v55_v22 = vand.u32 15, %v35_v21  ;;  %vm159_vm4 = vmpackc.low %vm1760_vm3, %vm1760_vm3  ;;  %v1697_v41 = vld [vmem:[%s2246_s4 + $0x2c] sm:$0xff]  }
   0x7   :  { %517 = vrot.lane.b32.xlu1 %v1685_v3, %s1759_s9  ;;  %1587 = vmatpush3.bf16.msra.mxu0 %v1689_v6  ;;  %vm158_vm2 = vmpackc.low %vm85_vm1, %vm85_vm1  ;;  %v48_v25 = vand.u32 15, %v34_v23  ;;  %v1869_v28 = vsel %vm159_vm4, 65537, %v1761_v26  ;;  %v1699_v56 = vld [vmem:[%s2246_s4 + $0x34] sm:$0xff]   ;;  %vm139_vm1 = vsmask.f32 7424  ;;  %v62_v6 = vand.u32 15, %v36_v59 }
   0x8   :  { %1588 = vmatprep.subr.bf16.mxu0 %v1691_v8  ;;  %vm1863_vm5 = vcmp.ne.s32.totalorder %v55_v22, 0  ;;  %v162_v27 = vsel %vm158_vm2, 65537, %v1761_v26  ;;  %vm1897_vm14 = vmand %vm136_vm11, %vm120_vm12  ;;  %v1700_v3 = vld [vmem:[%s2245_s2 + $0x50] sm:$0xff]   ;;  %v1706_v21 = vld [vmem:[%s2245_s2 + $0x68] ss:$0 sps:$4 sm:$0xff]  }
   0x9   :  { %1575 = vmatpush3.bf16.msra.mxu1 %v1687_v5  ;;  %vm160_vm8 = vmpackc.low %vm1863_vm5, %vm1863_vm5  ;;  %vm1874_vm10 = vcmp.ne.s32.totalorder %v48_v25, 15  ;;  %v1362_v33 = vcombine.low %v162_v27, %v1869_v28  ;;  %v1701_v5 = vld [vmem:[%s2246_s4 + $0x3c] sm:$0xff]   ;;  %vm1961_vm4 = vcmp.ne.s32.totalorder %v62_v6, 15  ;;  %v1707_v24 = vld [vmem:[%s2246_s4 + $0x8] sm:$0xff]   ;;  %v435_v30 = vsel %vm253_vm0, %v1706_v21, 0 }
   0xa   :  { %1576 = vmatprep.subr.bf16.mxu1 %v1688_v7  ;;  %v164_v35 = vsel %vm160_vm8, 65537, %v1761_v26  ;;  %vm185_vm13 = vmpackc.low %vm1874_vm10, %vm1874_vm10  ;;  %vm147_vm8 = vcmask 1047552   ;;  %v1716_v59 = vld [vmem:[%s2247_s6 + $0x48] sm:$0xff]   ;;  %v1727_v6 = vld [vmem:[%s2247_s6 + $0x20] sm:$0xff]  }
   0xb   :  { %1589 = vmatpush3.bf16.msra.mxu0 %v1691_v8  ;;  %v1363_v43 = vcombine.low %v164_v35, %v1869_v28  ;;  %vm1901_vm15 = vcmp.ne.s16.totalorder %v1362_v33, 0  ;;  %v189_v48 = vsel %vm185_vm13, 65537, %v1761_v26  ;;  %vm187_vm5 = vmpackc.low %vm1961_vm4, %vm1961_vm4  ;;  %v1738_v46 = vld [vmem:[%s2247_s6 + $0xb0] sm:$0xff]   ;;  %v1741_v63 = vld [vmem:[%s2247_s6 + $0xc8] sm:$0xff]  }
   0xc   :  { %1590 = vmatprep.subr.bf16.mxu0 %v1693_v9  ;;  %v1364_v57 = vcombine.low %v1869_v28, %v189_v48  ;;  %v191_v20 = vsel %vm187_vm5, 65537, %v1761_v26 }
   0xd   :  { %1577 = vmatpush3.bf16.msra.mxu1 %v1688_v7  ;;  %vm1927_vm2 = vcmp.ne.s16.totalorder %v1363_v43, 0  ;;  %v1365_v27 = vcombine.low %v1869_v28, %v191_v20 }
   0xe   :  { %1578 = vmatprep.subr.bf16.mxu1 %v1690_v10  ;;  %vm1933_vm3 = vcmp.ne.s16.totalorder %v1364_v57, 0 }
   0xf   :  { %1591 = vmatpush3.bf16.msra.mxu0 %v1693_v9 }
  0x10   :  { %1592 = vmatprep.subr.bf16.mxu0 %v1694_v11 }
  0x11   :  { %1579 = vmatpush3.bf16.msra.mxu1 %v1690_v10  ;;  %v1702_v10 = vld [vmem:[%s2245_s2 + $0x58] sm:$0xff]  }
  0x12   :  { %1672 = vmatprep.subr.msk.bf16.mxu1 %vm253_vm0, %v1692_v12 }
  0x13   :  { %1593 = vmatpush3.bf16.msra.mxu0 %v1694_v11  ;;  %v1703_v11 = vld [vmem:[%s2246_s4 + $0x44] ss:$0 sps:$4 sm:$0xff]  }
  0x14   :  { %1673 = vmatprep.subr.msk.bf16.mxu0 %vm253_vm0, %v1696_v13 }
  0x15   :  { %1581 = vmatpush3.bf16.msra.mxu1 %v255_v14 }
  0x16   :  { %1614 = vmatprep.subr.bf16.mxu1 %v1695_v15 }
  0x17   :  { %1595 = vmatpush3.bf16.msra.mxu0 %v340_v16  ;;  %v1704_v16 = vld [vmem:[%s2245_s2 + $0x60] sm:$0xff]  }
  0x18   :  { %1600 = vmatprep.subr.bf16.mxu0 %v1860_v17 }
  0x74   :  { %v108_v29 = vpop.permute.xlu0 %107 }
  0x75   :  { %v114_v31 = vsel %vm111_vm6, 0, %v108_v29  ;;  %v516_v34 = vpop.permute.xlu1 %515 }
  0x76   :  { %v118_v32 = vsel %vm117_vm7, %v114_v31, 0  ;;  %v520_v38 = vsel %vm111_vm6, 0, %v516_v34  ;;  %v1708_v31 = vld [vmem:[%s2246_s4 + $0x10] sm:$0xff]   ;;  %v1709_v34 = vld [vmem:[%s2246_s4 + $0x18] sm:$0xff]  }
  0x77   :  { %v121_v36 = vshrl.u32 %v118_v32, 16  ;;  %v124_v37 = vshll.u32 %v118_v32, 16  ;;  %1582 = vmatprep.mubr.msk.bf16.mxu1 %vm248_vm9, %v118_v32  ;;  %v1906_v47 = vsel %vm117_vm7, %v520_v38, 0 }
  0x78   :  { %v110_v39 = vpop.permute.xlu0 %109  ;;  %v525_v62 = vshrl.u32 %v1906_v47, 16  ;;  %v528_v9 = vshll.u32 %v1906_v47, 16 }
  0x79   :  { %v116_v40 = vsel %vm111_vm6, 0, %v110_v39  ;;  %v123_v42 = vrot.slane %v121_v36, 7  ;;  %v140_v49 = vrot.slane %v124_v37, 1  ;;  %v518_v14 = vpop.permute.xlu1 %517  ;;  %v1710_v39 = vld [vmem:[%s2246_s4 + $0x20] ss:$0 sps:$4 sm:$0xff]  }
  0x7a   :  { %v1893_v44 = vsel %vm117_vm7, %v116_v40, 0  ;;  %v1947_v7 = vrot.slane %v525_v62, 7  ;;  %v522_v18 = vsel %vm111_vm6, 0, %v518_v14  ;;  %vm1995_vm6 = vmand %vm147_vm8, %vm139_vm1  ;;  %v541_v38 = vrot.slane %v528_v9, 1 }
  0x7b   :  { %v127_v50 = vshrl.u32 %v1893_v44, 16  ;;  %v130_v51 = vshll.u32 %v1893_v44, 16  ;;  %1583 = vmatmul.mubr.msk.bf16.vlgmr.msra.gmra.mrb[0].mxu1 %vm248_vm9, %v1893_v44  ;;  %v126_v52 = vor.u32 %v124_v37, %v123_v42  ;;  %v141_v60 = vor.u32 %v140_v49, %v121_v36  ;;  %v1711_v44 = vld [vmem:[%s2246_s4 + $0x48] sm:$0xff]  }
  0x7c   :  { %1615 = vmatpush3.bf16.msra.mxu1 %v1695_v15  ;;  %1624 = vmatprep.mubr.msk.bf16.mxu1 %vm248_vm9, %v1906_v47  ;;  %v530_v13 = vor.u32 %v528_v9, %v1947_v7  ;;  %v604_v15 = vsel %vm253_vm0, %v1703_v11, 0  ;;  %v524_v22 = vsel %vm117_vm7, %v522_v18, 0  ;;  %vm2007_vm7 = vcmp.ne.s16.totalorder %v1365_v27, 0  ;;  %v1712_v47 = vld [vmem:[%s2246_s4 + $0x50] sm:$0xff]   ;;  %v1726_v9 = vld [vmem:[%s2247_s6 + $0x78] sm:$0xff]  }
  0x7d   :  { %v129_v53 = vrot.slane %v127_v50, 7  ;;  %v142_v54 = vrot.slane %v130_v51, 1  ;;  %1616 = vmatprep.subr.bf16.mxu1 %v1697_v41  ;;  %v138_v55 = vsel %vm1897_vm14, 0, %v126_v52  ;;  %v531_v32 = vshrl.u32 %v524_v22, 16  ;;  %v1713_v52 = vld [vmem:[%s2246_s4 + $0x58] sm:$0xff]  }
  0x7e   :  { %v174_v58 = vsel %vm1901_vm15, %v138_v55, 0  ;;  %v540_v19 = vsel %vm1897_vm14, 0, %v530_v13  ;;  %v534_v37 = vshll.u32 %v524_v22, 16  ;;  %v689_v43 = vsel %vm253_vm0, %v1710_v39, 0 }
  0x7f   :  { %v132_v61 = vor.u32 %v130_v51, %v129_v53  ;;  %1596 = vmatprep.mubr.msk.bf16.mxu0 %vm248_vm9, %v174_v58  ;;  %v143_v1 = vsel %vm139_vm1, %v141_v60, %v142_v54  ;;  %v549_v23 = vsel %vm1901_vm15, %v540_v19, 0  ;;  %v144_v25 = vor.u32 %v142_v54, %v127_v50  ;;  %v1714_v53 = vld [vmem:[%s2246_s4 + $0x60] sm:$0xff]   ;;  %v1715_v54 = vld [vmem:[%s2246_s4 + $0x68] ss:$0 sps:$4 sm:$0xff]   ;;  %v1717_v60 = vld [vmem:[%s2247_s6 + $0x50] sm:$0xff]  }
  0x80   :  { %1617 = vmatpush3.bf16.msra.mxu1 %v1697_v41  ;;  %v200_v8 = vsel %vm1933_vm3, %v143_v1, 0  ;;  %v533_v36 = vrot.slane %v531_v32, 7  ;;  %v542_v41 = vor.u32 %v541_v38, %v525_v62  ;;  %v1721_v62 = vld [vmem:[%s2247_s6 + $0x8] sm:$0xff]   ;;  %v1723_v1 = vld [vmem:[%s2247_s6 + $0x10] sm:$0xff]  }
  0x81   :  { %1618 = vmatprep.subr.bf16.mxu1 %v1699_v56  ;;  %v133_v0 = vsel %vm120_vm12, %v123_v42, %v132_v61  ;;  %v149_v28 = vsel %vm1995_vm6, %v144_v25, 0  ;;  %v543_v42 = vrot.slane %v534_v37, 1  ;;  %v1719_v61 = vld [vmem:[%s2247_s6] sm:$0xff]  }
  0x82   :  { %v175_v4 = vsel %vm1927_vm2, %v133_v0, 0  ;;  %v201_v35 = vsel %vm2007_vm7, %v149_v28, 0  ;;  %v536_v40 = vor.u32 %v534_v37, %v533_v36  ;;  %v1718_v0 = vld [vmem:[%s2247_s6 + $0x58] sm:$0xff]  }
  0x83   :  { %1597 = vmatmul.mubr.msk.bf16.vlgmr.msra.gmra.mrb[0].mxu0 %vm248_vm9, %v175_v4  ;;  %v544_v49 = vsel %vm139_vm1, %v542_v41, %v543_v42  ;;  %v545_v55 = vor.u32 %v543_v42, %v531_v32  ;;  %v1725_v4 = vld [vmem:[%s2247_s6 + $0x18] sm:$0xff]  }
  0x84   :  { %1601 = vmatpush3.bf16.msra.mxu0 %v1860_v17  ;;  %1619 = vmatpush3.bf16.msra.mxu1 %v1699_v56  ;;  %v1705_v17 = vld [vmem:[%s2246_s4] sm:$0xff]   ;;  %v537_v48 = vsel %vm120_vm12, %v1947_v7, %v536_v40  ;;  %v551_v51 = vsel %vm1933_vm3, %v544_v49, 0  ;;  %v784_v56 = vsel %vm253_vm0, %v1715_v54, 0  ;;  %v1724_v7 = vld [vmem:[%s2247_s6 + $0x70] sm:$0xff]  }
  0x85   :  { %1610 = vmatprep.mubr.msk.bf16.mxu0 %vm248_vm9, %v200_v8  ;;  %1602 = vmatprep.subr.bf16.mxu0 %v1700_v3  ;;  %v550_v50 = vsel %vm1927_vm2, %v537_v48, 0  ;;  %v548_v57 = vsel %vm1995_vm6, %v545_v55, 0  ;;  %v1729_v8 = vld [vmem:[%s2247_s6 + $0x28] sm:$0xff]  }
  0x86   :  { %1620 = vmatprep.subr.bf16.mxu1 %v1701_v5  ;;  %v552_v58 = vsel %vm2007_vm7, %v548_v57, 0 }
  0x88   :  { %1603 = vmatpush3.bf16.msra.mxu0 %v1700_v3  ;;  %1621 = vmatpush3.bf16.msra.mxu1 %v1701_v5  ;;  %v1720_v3 = vld [vmem:[%s2247_s6 + $0x60] sm:$0xff]   ;;  %v1722_v5 = vld [vmem:[%s2247_s6 + $0x68] sm:$0xff]  }
  0x89   :  { %1604 = vmatprep.subr.bf16.mxu0 %v1702_v10  ;;  %1675 = vmatprep.subr.msk.bf16.mxu1 %vm253_vm0, %v1703_v11  ;;  %v1730_v11 = vld [vmem:[%s2247_s6 + $0x88] sm:$0xff]  }
  0x8c   :  { %1605 = vmatpush3.bf16.msra.mxu0 %v1702_v10  ;;  %1623 = vmatpush3.bf16.msra.mxu1 %v604_v15  ;;  %v1728_v10 = vld [vmem:[%s2247_s6 + $0x80] sm:$0xff]  }
  0x8d   :  { %1606 = vmatprep.subr.bf16.mxu0 %v1704_v16  ;;  %1628 = vmatprep.subr.bf16.mxu1 %v1705_v17 }
  0x8f   :  { %1625 = vmatmul.mubr.msk.bf16.vlgmr.msra.gmra.mrb[4].mxu1 %vm248_vm9, %v524_v22 }
  0x90   :  { %1607 = vmatpush3.bf16.msra.mxu0 %v1704_v16  ;;  %1629 = vmatpush3.bf16.msra.mxu1 %v1705_v17 }
  0x91   :  { %1638 = vmatprep.mubr.msk.bf16.mxu1 %vm248_vm9, %v549_v23  ;;  %1674 = vmatprep.subr.msk.bf16.mxu0 %vm253_vm0, %v1706_v21 }
  0x92   :  { %1630 = vmatprep.subr.bf16.mxu1 %v1707_v24 }
  0x94   :  { %1609 = vmatpush3.bf16.msra.mxu0 %v435_v30  ;;  %1631 = vmatpush3.bf16.msra.mxu1 %v1707_v24  ;;  %v1447_v24 = vld [vmem:[%s2248_s5] ss:$0 sm:$0xff] }
  0x95   :  { %1632 = vmatprep.subr.bf16.mxu1 %v1708_v31  ;;  %1047 = vmatprep.subr.bf16.mxu0 %v1761_v26 }
  0x97   :  { %1611 = vmatmul.mubr.msk.bf16.vlgmr.msra.gmra.mrb[0].mxu0 %vm248_vm9, %v201_v35 }
  0x98   :  { %1633 = vmatpush3.bf16.msra.mxu1 %v1708_v31  ;;  %1048 = vmatpush1.bf16.msra.mxu0 %v1716_v59 }
  0x99   :  { %1634 = vmatprep.subr.bf16.mxu1 %v1709_v34  ;;  %1049 = vmatprep.subr.bf16.mxu0 %v1761_v26 }
  0x9c   :  { %1635 = vmatpush3.bf16.msra.mxu1 %v1709_v34  ;;  %1050 = vmatpush1.bf16.msra.mxu0 %v1717_v60 }
  0x9d   :  { %1676 = vmatprep.subr.msk.bf16.mxu1 %vm253_vm0, %v1710_v39  ;;  %1051 = vmatprep.subr.bf16.mxu0 %v1761_v26 }
  0xa0   :  { %1637 = vmatpush3.bf16.msra.mxu1 %v689_v43  ;;  %1052 = vmatpush1.bf16.msra.mxu0 %v1718_v0 }
  0xa1   :  { %1642 = vmatprep.subr.bf16.mxu1 %v1711_v44  ;;  %1053 = vmatprep.subr.bf16.mxu0 %v1761_v26 }
  0xa3   :  { %1639 = vmatmul.mubr.msk.bf16.vlgmr.msra.gmra.mrb[4].mxu1 %vm248_vm9, %v550_v50  ;;  %v1731_v50 = vld [vmem:[%s2247_s6 + $0x30] sm:$0xff]  }
  0xa4   :  { %1643 = vmatpush3.bf16.msra.mxu1 %v1711_v44  ;;  %1652 = vmatprep.mubr.msk.bf16.mxu1 %vm248_vm9, %v551_v51  ;;  %v1405_v51 = vld [vmem:[%s2249_s3] ss:$0 sm:$0xff]  ;;  %s1762_s3 = smov 8  }
  0xa5   :  { %1644 = vmatprep.subr.bf16.mxu1 %v1712_v47  ;;  %1054 = vmatpush1.bf16.msra.mxu0 %v1720_v3 }
  0xa6   :  { %1055 = vmatprep.subr.bf16.mxu0 %v1761_v26 }
  0xa8   :  { %1645 = vmatpush3.bf16.msra.mxu1 %v1712_v47 }
  0xa9   :  { %1646 = vmatprep.subr.bf16.mxu1 %v1713_v52  ;;  %1056 = vmatpush1.bf16.msra.mxu0 %v1722_v5 }
  0xaa   :  { %1057 = vmatprep.subr.bf16.mxu0 %v1761_v26 }
  0xac   :  { %1647 = vmatpush3.bf16.msra.mxu1 %v1713_v52  ;;  %v1733_v52 = vld [vmem:[%s2247_s6 + $0x38] sm:$0xff]  }
  0xad   :  { %1648 = vmatprep.subr.bf16.mxu1 %v1714_v53  ;;  %1058 = vmatpush1.bf16.msra.mxu0 %v1724_v7 }
  0xae   :  { %1059 = vmatprep.subr.bf16.mxu0 %v1761_v26 }
  0xb0   :  { %1649 = vmatpush3.bf16.msra.mxu1 %v1714_v53 }
  0xb1   :  { %1677 = vmatprep.subr.msk.bf16.mxu1 %vm253_vm0, %v1715_v54  ;;  %1060 = vmatpush1.bf16.msra.mxu0 %v1726_v9  ;;  %vm886_vm0 = vcmask 64512  }
  0xb2   :  { %1061 = vmatprep.subr.bf16.mxu0 %v1761_v26  ;;  %vm2137_vm10 = vmneg %vm886_vm0 }
  0xb4   :  { %1651 = vmatpush3.bf16.msra.mxu1 %v784_v56 }
  0xb5   :  { %1156 = vmatprep.subr.bf16.mxu1 %v1761_v26  ;;  %1062 = vmatpush1.bf16.msra.mxu0 %v1728_v10 }
  0xb6   :  { %1063 = vmatprep.subr.bf16.mxu0 %v1761_v26 }
  0xb7   :  { %1653 = vmatmul.mubr.msk.bf16.vlgmr.msra.gmra.mrb[4].mxu1 %vm248_vm9, %v552_v58  ;;  %vm1042_vm9 = vcmask 130048  }
  0xb8   :  { %1157 = vmatpush1.bf16.msra.mxu1 %v1719_v61 }
  0xb9   :  { %1158 = vmatprep.subr.bf16.mxu1 %v1761_v26  ;;  %1064 = vmatpush1.bf16.msra.mxu0 %v1730_v11  ;;  %v1732_v11 = vld [vmem:[%s2247_s6 + $0x90] sm:$0xff]  }
  0xba   :  { %1284 = vmatprep.subr.bf16.mxu0 %v1761_v26 }
  0xbc   :  { %1159 = vmatpush1.bf16.msra.mxu1 %v1721_v62  ;;  %v1735_v62 = vld [vmem:[%s2247_s6 + $0x40] sm:$0xff]  }
  0xbd   :  { %1160 = vmatprep.subr.bf16.mxu1 %v1761_v26 }
  0xc0   :  { %1161 = vmatpush1.bf16.msra.mxu1 %v1723_v1 }
  0xc1   :  { %1162 = vmatprep.subr.bf16.mxu1 %v1761_v26 }
  0xc4   :  { %1163 = vmatpush1.bf16.msra.mxu1 %v1725_v4 }
  0xc5   :  { %1164 = vmatprep.subr.bf16.mxu1 %v1761_v26 }
  0xc8   :  { %1165 = vmatpush1.bf16.msra.mxu1 %v1727_v6 }
  0xc9   :  { %1166 = vmatprep.subr.bf16.mxu1 %v1761_v26 }
  0xcc   :  { %1167 = vmatpush1.bf16.msra.mxu1 %v1729_v8 }
  0xcd   :  { %1168 = vmatprep.subr.bf16.mxu1 %v1761_v26 }
  0xd0   :  { %1169 = vmatpush1.bf16.msra.mxu1 %v1731_v50 }
  0xd1   :  { %1170 = vmatprep.subr.bf16.mxu1 %v1761_v26 }
  0xd4   :  { %1171 = vmatpush1.bf16.msra.mxu1 %v1733_v52  ;;  %v1742_v52 = vld [vmem:[%s2247_s6 + $0xd0] sm:$0xff]  }
  0xd5   :  { %1172 = vmatprep.subr.bf16.mxu1 %v1761_v26 }
  0xd8   :  { %1173 = vmatpush1.bf16.msra.mxu1 %v1735_v62 }
 0x14e   :  { %v1584_v12 = vpop.f32.mrb[0].mxu1 }
 0x14f   :  { %v291_v13 = vpop.f32.mrb[1].mxu1 }
 0x150   :  { %v1585_v14 = vpop.f32.mrb[2].mxu1 }
 0x151   :  { %v294_v15 = vpop.f32.mrb[3].mxu1 }
 0x16a   :  { %v1612_v16 = vpop.f32.mrb[0].mxu0 }
 0x16b   :  { %v1656_v17 = vadd.f32 %v1612_v16, %v1584_v12  ;;  %v471_v18 = vpop.f32.mrb[1].mxu0 }
 0x16c   :  { %v1657_v19 = vadd.f32 %v471_v18, %v291_v13  ;;  %v1613_v20 = vpop.f32.mrb[2].mxu0 }
 0x16d   :  { %v1658_v21 = vadd.f32 %v1613_v20, %v1585_v14  ;;  %v474_v22 = vpop.f32.mrb[3].mxu0  ;;  %v499_v53 = vadd.f32 %v1656_v17, %v1405_v51 }
 0x16e   :  { %v1659_v23 = vadd.f32 %v474_v22, %v294_v15  ;;  %v497_v55 = vadd.f32 %v1657_v19, %v1405_v51 }
 0x16f   :  { %v500_v57 = vadd.f32 %v1658_v21, %v1405_v51  ;;  %v1734_v21 = vld [vmem:[%s2247_s6 + $0x98] sm:$0xff]  }
 0x170   :  { %v498_v60 = vadd.f32 %v1659_v23, %v1405_v51 }
 0x18a   :  { %v1654_v25 = vpop.f32.mrb[4].mxu1 }
 0x18b   :  { %v848_v27 = vadd.f32 %v1654_v25, %v1447_v24  ;;  %v820_v30 = vpop.f32.mrb[5].mxu1 }
 0x18c   :  { %v846_v31 = vadd.f32 %v1447_v24, %v820_v30  ;;  %v1655_v32 = vpop.f32.mrb[6].mxu1 }
 0x18d   :  { %v1450_v28 = vmul.f32 -1.442695, %v848_v27  ;;  %v849_v34 = vadd.f32 %v1655_v32, %v1447_v24  ;;  %v823_v35 = vpop.f32.mrb[7].mxu1 }
 0x18e   :  { %v1448_v36 = vmul.f32 -1.442695, %v846_v31  ;;  %v847_v37 = vadd.f32 %v1447_v24, %v823_v35 }
 0x18f   :  { %1743 = vpow2.f32 %v1450_v28  ;;  %v1451_v38 = vmul.f32 -1.442695, %v849_v34  ;;  %v1736_v34 = vld [vmem:[%s2247_s6 + $0xa0] sm:$0xff]  }
 0x190   :  { %1745 = vpow2.f32 %v1448_v36  ;;  %v1449_v39 = vmul.f32 -1.442695, %v847_v37 }
 0x191   :  { %1747 = vpow2.f32 %v1451_v38 }
 0x192   :  { %1749 = vpow2.f32 %v1449_v39 }
 0x199   :  { %v1744_v40 = vpop.eup %1743 }
 0x19a   :  { %v1746_v41 = vpop.eup %1745  ;;  %v864_v42 = vadd.f32 1.0, %v1744_v40 }
 0x19b   :  { %v1748_v43 = vpop.eup %1747  ;;  %v862_v44 = vadd.f32 1.0, %v1746_v41 }
 0x19c   :  { %v1750_v48 = vpop.eup %1749  ;;  %1751 = vrcp.f32 %v864_v42  ;;  %v865_v49 = vadd.f32 1.0, %v1748_v43  ;;  %v1737_v43 = vld [vmem:[%s2247_s6 + $0xa8] sm:$0xff]  }
 0x19d   :  { %1753 = vrcp.f32 %v862_v44  ;;  %v863_v47 = vadd.f32 1.0, %v1750_v48 }
 0x19e   :  { %1755 = vrcp.f32 %v865_v49  ;;  %v1739_v49 = vld [vmem:[%s2247_s6 + $0xb8] sm:$0xff]  }
 0x19f   :  { %1757 = vrcp.f32 %v863_v47  ;;  %v1740_v47 = vld [vmem:[%s2247_s6 + $0xc0] sm:$0xff]  }
 0x1a6   :  { %v1752_v54 = vpop.eup %1751 }
 0x1a7   :  { %v1754_v56 = vpop.eup %1753  ;;  %v876_v58 = vmul.f32 %v1752_v54, %v499_v53 }
 0x1a8   :  { %v1756_v59 = vpop.eup %1755  ;;  %v874_v61 = vmul.f32 %v1754_v56, %v497_v55 }
 0x1a9   :  { %v1758_v0 = vpop.eup %1757  ;;  %v877_v1 = vmul.f32 %v1756_v59, %v500_v57 }
 0x1aa   :  { %v875_v3 = vmul.f32 %v1758_v0, %v498_v60 }
 0x1ab   :  { %v879_v4 = vpack.c.bf16 %v877_v1, %v876_v58 }
 0x1ac   :  { %v878_v5 = vpack.c.bf16 %v875_v3, %v874_v61 }
 0x1ad   :  { %884 = vrot.lane.b32.xlu1 %v879_v4, %s1762_s3 }
 0x1ae   :  { %882 = vrot.lane.b32.xlu0 %v878_v5, %s1762_s3 }
 0x21f   :  { %v885_v6 = vpop.permute.xlu1 %884 }
 0x220   :  { %v2134_v7 = vsel %vm886_vm0, %v885_v6, 0  ;;  %v883_v8 = vpop.permute.xlu0 %882  ;;  %v2146_v14 = vsel %vm886_vm0, 0, %v885_v6 }
 0x221   :  { %v914_v9 = vshrl.u32 %v2134_v7, 16  ;;  %v2144_v12 = vsel %vm886_vm0, 0, %v883_v8  ;;  %v893_v13 = vsel %vm886_vm0, %v883_v8, 0  ;;  %v917_v16 = vshll.u32 %v2134_v7, 16 }
 0x222   :  { %1479 = vmatprep.mubr.msk.bf16.mxu0 %vm1042_vm9, %v893_v13  ;;  %v895_v17 = vshrl.u32 %v2144_v12, 16  ;;  %v901_v18 = vshrl.u32 %v893_v13, 16  ;;  %v904_v19 = vshll.u32 %v893_v13, 16  ;;  %v898_v20 = vshll.u32 %v2144_v12, 16 }
 0x223   :  { %v916_v15 = vrot.slane %v914_v9, 7  ;;  %1481 = vmatmul.mubr.msk.bf16.vlgmr.msra.gmra.mrb[4].mxu0 %vm2137_vm10, %v883_v8  ;;  %v907_v27 = vshrl.u32 %v2146_v14, 16  ;;  %v933_v30 = vrot.slane %v917_v16, 1  ;;  %v910_v44 = vshll.u32 %v2146_v14, 16 }
 0x224   :  { %1285 = vmatpush1.bf16.msra.mxu0 %v1732_v11  ;;  %v897_v23 = vrot.slane %v895_v17, 7  ;;  %v903_v24 = vrot.slane %v901_v18, 7  ;;  %v931_v25 = vrot.slane %v904_v19, 1  ;;  %1482 = vmatprep.mubr.msk.bf16.mxu0 %vm1042_vm9, %v2134_v7  ;;  %v927_v50 = vrot.slane %v898_v20, 1 }
 0x225   :  { %v919_v22 = vor.u32 %v917_v16, %v916_v15  ;;  %1286 = vmatprep.subr.bf16.mxu0 %v1761_v26  ;;  %v909_v39 = vrot.slane %v907_v27, 7  ;;  %v936_v51 = vor.u32 %v933_v30, %v914_v9  ;;  %v929_v54 = vrot.slane %v910_v44, 1  ;;  %v1529_v15 = vld [vmem:[%s2250_s7] ss:$0 sm:$0xff] }
 0x226   :  { %v900_v31 = vor.u32 %v898_v20, %v897_v23  ;;  %v906_v32 = vor.u32 %v904_v19, %v903_v24  ;;  %v932_v28 = vor.u32 %v931_v25, %v901_v18  ;;  %v928_v53 = vor.u32 %v927_v50, %v895_v17 }
 0x227   :  { %v920_v36 = vsel %vm120_vm12, %v903_v24, %v919_v22  ;;  %v912_v45 = vor.u32 %v910_v44, %v909_v39  ;;  %v942_v55 = vsel %vm1995_vm6, %v936_v51, 0  ;;  %v935_v58 = vor.u32 %v929_v54, %v907_v27 }
 0x228   :  { %1287 = vmatpush1.bf16.msra.mxu0 %v1734_v21  ;;  %v926_v35 = vsel %vm1897_vm14, 0, %v906_v32  ;;  %v934_v37 = vsel %vm139_vm1, %v932_v28, %v933_v30  ;;  %v925_v40 = vsel %vm1897_vm14, 0, %v900_v31  ;;  %v946_v41 = vsel %vm1927_vm2, %v920_v36, 0 }
 0x229   :  { %1288 = vmatprep.subr.bf16.mxu0 %v1761_v26  ;;  %v944_v38 = vsel %vm1901_vm15, %v926_v35, 0  ;;  %v948_v42 = vsel %vm1933_vm3, %v934_v37, 0  ;;  %v913_v48 = vsel %vm120_vm12, %v897_v23, %v912_v45  ;;  %v930_v56 = vsel %vm139_vm1, %v928_v53, %v929_v54 }
 0x22a   :  { %1494 = vmatprep.mubr.msk.bf16.mxu1 %vm1042_vm9, %v944_v38  ;;  %v950_v57 = vsel %vm2007_vm7, %v942_v55, 0 }
 0x22b   :  { %1484 = vmatmul.mubr.msk.bf16.gmra.mrb[8].mxu0 %vm2137_vm10, %v885_v6  ;;  %1495 = vmatmul.mubr.msk.bf16.vlgmr.msra.gmra.mrb[8].mxu1 %vm1901_vm15, %v925_v40 }
 0x22c   :  { %1289 = vmatpush1.bf16.msra.mxu0 %v1736_v34  ;;  %1496 = vmatprep.mubr.msk.bf16.mxu1 %vm1042_vm9, %v946_v41 }
 0x22d   :  { %1525 = vmatprep.mubr.msk.bf16.mxu0 %vm1042_vm9, %v948_v42  ;;  %1290 = vmatprep.subr.bf16.mxu0 %v1761_v26 }
 0x230   :  { %1291 = vmatpush1.bf16.msra.mxu0 %v1737_v43 }
 0x231   :  { %1292 = vmatprep.subr.bf16.mxu0 %v1761_v26 }
 0x233   :  { %1497 = vmatmul.mubr.msk.bf16.gmra.mrb[12].mxu1 %vm1927_vm2, %v913_v48 }
 0x234   :  { %1293 = vmatpush1.bf16.msra.mxu0 %v1738_v46 }
 0x235   :  { %1294 = vmatprep.subr.bf16.mxu0 %v1761_v26 }
 0x238   :  { %1295 = vmatpush1.bf16.msra.mxu0 %v1739_v49 }
 0x239   :  { %1296 = vmatprep.subr.bf16.mxu0 %v1761_v26 }
 0x23c   :  { %1297 = vmatpush1.bf16.msra.mxu0 %v1740_v47 }
 0x23d   :  { %1298 = vmatprep.subr.bf16.mxu0 %v1761_v26 }
 0x240   :  { %1299 = vmatpush1.bf16.msra.mxu0 %v1741_v63 }
 0x241   :  { %1300 = vmatprep.subr.bf16.mxu0 %v1761_v26  ;;  %v941_v26 = vsel %vm1995_vm6, %v935_v58, 0 }
 0x244   :  { %1301 = vmatpush1.bf16.msra.mxu0 %v1742_v52 }
 0x247   :  { %1526 = vmatmul.mubr.msk.bf16.vlgmr.msra.gmra.mrb[12].mxu0 %vm1933_vm3, %v930_v56 }
 0x248   :  { %1527 = vmatprep.mubr.msk.bf16.mxu0 %vm1042_vm9, %v950_v57 }
 0x24f   :  { %1528 = vmatmul.mubr.msk.bf16.gmra.mrb[16].mxu0 %vm2007_vm7, %v941_v26 }
 0x2f6   :  { %v1081_v59 = vpop.f32.mrb[4].mxu0 }
 0x2f7   :  { %v1083_v60 = vpop.f32.mrb[5].mxu0 }
 0x2f8   :  { %v1084_v61 = vpop.f32.mrb[6].mxu0 }
 0x2f9   :  { %v1086_v62 = vpop.f32.mrb[7].mxu0 }
 0x2fe   :  { %v1089_v0 = vpop.f32.mrb[8].mxu0  ;;  %v1190_v1 = vpop.f32.mrb[8].mxu1 }
 0x2ff   :  { %v1091_v2 = vpop.f32.mrb[9].mxu0  ;;  %v1191_v3 = vadd.f32 %v1190_v1, %v1081_v59  ;;  %v1192_v4 = vpop.f32.mrb[9].mxu1 }
 0x300   :  { %v1092_v5 = vpop.f32.mrb[10].mxu0  ;;  %v1193_v6 = vpop.f32.mrb[10].mxu1 }
 0x301   :  { %v1094_v7 = vpop.f32.mrb[11].mxu0  ;;  %v1194_v8 = vadd.f32 %v1193_v6, %v1084_v61  ;;  %v1195_v9 = vpop.f32.mrb[11].mxu1 }
 0x306   :  { %v1198_v10 = vpop.f32.mrb[12].mxu1 }
 0x307   :  { %v1199_v29 = vadd.f32 %v1198_v10, %v1089_v0  ;;  %v1200_v11 = vpop.f32.mrb[13].mxu1 }
 0x308   :  { %v1201_v12 = vpop.f32.mrb[14].mxu1 }
 0x309   :  { %v1202_v33 = vadd.f32 %v1201_v12, %v1092_v5  ;;  %v1203_v13 = vpop.f32.mrb[15].mxu1 }
 0x31a   :  { %v1318_v14 = vpop.f32.mrb[12].mxu0 }
 0x31b   :  { %v1333_v16 = vadd.f32 %v1318_v14, %v1191_v3  ;;  %v1320_v17 = vpop.f32.mrb[13].mxu0 }
 0x31c   :  { %v1321_v18 = vpop.f32.mrb[14].mxu0 }
 0x31d   :  { %v1344_v19 = vadd.f32 %v1529_v15, %v1333_v16  ;;  %v1334_v20 = vadd.f32 %v1321_v18, %v1194_v8  ;;  %v1323_v21 = vpop.f32.mrb[15].mxu0 }
 0x31f   :  { %v1348_v22 = vmax.f32 %v1344_v19, 0.0  ;;  %v1345_v23 = vadd.f32 %v1529_v15, %v1334_v20 }
 0x321   :  { %1352 = vst [vmem:[%s2251_s8] sm:$0xff] %v1348_v22  ;;  %v1349_v24 = vmax.f32 %v1345_v23, 0.0 }
 0x322   :  { %v1326_v25 = vpop.f32.mrb[16].mxu0 }
 0x323   :  { %1353 = vst [vmem:[%s2251_s8 + $0x8] sm:$0xff] %v1349_v24  ;;  %v1335_v27 = vadd.f32 %v1326_v25, %v1199_v29  ;;  %v1328_v30 = vpop.f32.mrb[17].mxu0 }
 0x324   :  { %v1329_v31 = vpop.f32.mrb[18].mxu0 }
 0x325   :  { %v1346_v32 = vadd.f32 %v1529_v15, %v1335_v27  ;;  %v1336_v28 = vadd.f32 %v1329_v31, %v1202_v33  ;;  %v1331_v34 = vpop.f32.mrb[19].mxu0 }
 0x327   :  { %v1350_v35 = vmax.f32 %v1346_v32, 0.0  ;;  %v1347_v36 = vadd.f32 %v1529_v15, %v1336_v28 }
 0x329   :  { %1354 = vst [vmem:[%s2251_s8 + $0x10] sm:$0xff] %v1350_v35  ;;  %v1351_v37 = vmax.f32 %v1347_v36, 0.0 }
 0x32b   :  { %1355 = vst [vmem:[%s2251_s8 + $0x18] sm:$0xff] %v1351_v37 }

</bundles_post_ra>
